<compile_context>
chip_gen: v7x
topology: tpu7x:2x2x1
jax: 0.10.0
libtpu: 0.0.40
codegen_flags: <defaults>
</compile_context>

<pallas_src>
import functools

import jax
import jax.numpy as jnp
import numpy as np
from jax.experimental import pallas as pl
from jax.experimental.pallas import tpu as pltpu


def _mha_kernel(x_ref, y_ref, wq_ref, bq_ref, wk_ref, bk_ref, wv_ref, bv_ref,
                wp_ref, bp_ref, out_ref, attn_ref, *, approx_recip):
    # x_ref: (1, bq, c)  y_ref: (1, m, d)
    # per-head weights: wq (H, c, hd), wk/wv (H, d, hd), wp (H, hd, c)
    num_heads = wq_ref.shape[0]
    x = x_ref[0]                      # (bq, c)  compute dtype (bf16 default)
    y = y_ref[0]                      # (m, d)
    cdt = x.dtype

    # Heads live on the leading (batch) axis of every einsum -> no lane slicing.
    xb = jnp.broadcast_to(x[None], (num_heads,) + x.shape)   # (H, bq, c)
    yb = jnp.broadcast_to(y[None], (num_heads,) + y.shape)   # (H, m, d)

    # Per-head projections (MXU, f32 accumulation).  Attention scale is already
    # folded into wq/bq by the wrapper.  Biases stay f32.
    q = jnp.einsum('hnc,hcd->hnd', xb, wq_ref[...],
                   preferred_element_type=jnp.float32) + bq_ref[...]   # (H, bq, hd)
    k = jnp.einsum('hmc,hcd->hmd', yb, wk_ref[...],
                   preferred_element_type=jnp.float32) + bk_ref[...]   # (H, m, hd)
    v = jnp.einsum('hmc,hcd->hmd', yb, wv_ref[...],
                   preferred_element_type=jnp.float32) + bv_ref[...]   # (H, m, hd)

    # Scores for all heads in one batched matmul: (H, bq, m).
    s = jnp.einsum('hnd,hmd->hnm', q.astype(cdt), k.astype(cdt),
                   preferred_element_type=jnp.float32)

    # TODO(synk): the optional `mask` argument of the PyTorch forward is not
    # implemented (the tested path uses mask=None).

    # Softmax over the key axis (lane-dense last dim); approx reciprocal -> EUP.
    s_max = jnp.max(s, axis=-1, keepdims=True)
    e = jnp.exp(s - s_max)
    p = e * pl.reciprocal(jnp.sum(e, axis=-1, keepdims=True), approx=approx_recip)

    attn_ref[0] = p.astype(attn_ref.dtype)          # (H, bq, m), M lane-dense

    # Context and output projection; the head reduction is a cheap VPU sum over
    # the leading axis (no lane concatenation).
    ctx = jnp.einsum('hnm,hmd->hnd', p.astype(cdt), v.astype(cdt),
                     preferred_element_type=jnp.float32)               # (H, bq, hd)
    out = jnp.sum(
        jnp.einsum('hnd,hdc->hnc', ctx.astype(cdt), wp_ref[...],
                   preferred_element_type=jnp.float32),
        axis=0) + bp_ref[0]                                            # (bq, c)
    out_ref[0] = out.astype(out_ref.dtype)


def multi_head_attention(x, y, params, num_heads, *,
                         compute_dtype=jnp.bfloat16,
                         block_q=None,
                         transpose_attention=True):
    """Forward pass matching the PyTorch MultiHeadAttention module.

    x: (b, n, dim_self), y: (b, m, dim_ref) or None (self-attention)
    params: (wq, bq, wkv, bkv, wp, bp) with weights stored as (in, out) and
            biases as (1, out) (i.e. already-transposed PyTorch Linears).
    Returns (out, attention):
      out:       (b, n, dim_self)  float32
      attention: (b, n, m, num_heads) if transpose_attention else
                 (b, num_heads, n, m)  (lane-dense kernel layout)
    """
    if y is None:
        y = x
    wq, bq, wkv, bkv, wp, bp = params
    b, n, c = x.shape
    _, m, d = y.shape
    assert c % num_heads == 0
    hd = c // num_heads
    scale = float(hd) ** (-0.5)
    f32 = jnp.float32

    # ---- one-time weight preparation (plain JAX, outside the kernel) --------
    # Fold the attention scale into the query projection.
    wq_h = (wq.astype(f32) * scale).reshape(c, num_heads, hd).transpose(1, 0, 2)
    bq_h = (bq.astype(f32) * scale).reshape(num_heads, 1, hd)
    # Split keys/values (PyTorch (m, 2, H, hd) reshape: first c cols = keys).
    wk_h = wkv[:, :c].astype(f32).reshape(d, num_heads, hd).transpose(1, 0, 2)
    wv_h = wkv[:, c:].astype(f32).reshape(d, num_heads, hd).transpose(1, 0, 2)
    bk_h = bkv[:, :c].astype(f32).reshape(num_heads, 1, hd)
    bv_h = bkv[:, c:].astype(f32).reshape(num_heads, 1, hd)
    wp_h = wp.astype(f32).reshape(num_heads, hd, c)
    bp_f = bp.astype(f32)

    # Matmul operands in the compute dtype (bf16 = native MXU, half the DMA).
    xc = x.astype(compute_dtype)
    yc = y.astype(compute_dtype)
    wq_c = wq_h.astype(compute_dtype)
    wk_c = wk_h.astype(compute_dtype)
    wv_c = wv_h.astype(compute_dtype)
    wp_c = wp_h.astype(compute_dtype)

    # ---- tiling over the query axis ------------------------------------------
    if block_q is None:
        block_q = 128 if (n % 128 == 0 and n > 128) else n
    block_q = min(block_q, n)
    assert n % block_q == 0, "block_q must divide the query length"
    n_tiles = n // block_q

    # ---- explicit VMEM budget (must stay under v7x's 64 MiB) -----------------
    def _nbytes(shape, dtype):
        size = 1
        for s in shape:
            size *= int(s)
        return size * jnp.dtype(dtype).itemsize

    block_bytes = (
        _nbytes((1, block_q, c), compute_dtype)
        + _nbytes((1, m, d), compute_dtype)
        + 3 * _nbytes((num_heads, max(c, d), hd), compute_dtype)
        + _nbytes((num_heads, hd, c), compute_dtype)
        + 3 * _nbytes((num_heads, 1, hd), f32) + _nbytes((1, c), f32)
        + _nbytes((1, block_q, c), f32)
        + _nbytes((1, num_heads, block_q, m), f32))
    scratch_bytes = (3 * _nbytes((num_heads, max(block_q, m), hd), f32)
                     + 3 * _nbytes((num_heads, block_q, m), f32)
                     + 2 * _nbytes((num_heads, block_q, c), f32))
    vmem_limit = int(min(max(2 * block_bytes + scratch_bytes + (4 << 20),
                             32 << 20), 60 << 20))

    kernel = functools.partial(
        _mha_kernel, approx_recip=(compute_dtype != jnp.float32))

    out, attn_bhnm = pl.pallas_call(
        kernel,
        out_shape=(
            jax.ShapeDtypeStruct((b, n, c), jnp.float32),
            jax.ShapeDtypeStruct((b, num_heads, n, m), jnp.float32),
        ),
        grid_spec=pltpu.PrefetchScalarGridSpec(
            num_scalar_prefetch=0,
            grid=(b, n_tiles),
            in_specs=[
                pl.BlockSpec((1, block_q, c), lambda i, j: (i, j, 0)),        # x
                pl.BlockSpec((1, m, d), lambda i, j: (i, 0, 0)),              # y
                pl.BlockSpec((num_heads, c, hd), lambda i, j: (0, 0, 0)),     # Wq (scaled)
                pl.BlockSpec((num_heads, 1, hd), lambda i, j: (0, 0, 0)),     # bq (scaled)
                pl.BlockSpec((num_heads, d, hd), lambda i, j: (0, 0, 0)),     # Wk
                pl.BlockSpec((num_heads, 1, hd), lambda i, j: (0, 0, 0)),     # bk
                pl.BlockSpec((num_heads, d, hd), lambda i, j: (0, 0, 0)),     # Wv
                pl.BlockSpec((num_heads, 1, hd), lambda i, j: (0, 0, 0)),     # bv
                pl.BlockSpec((num_heads, hd, c), lambda i, j: (0, 0, 0)),     # Wp
                pl.BlockSpec((1, c), lambda i, j: (0, 0)),                    # bp
            ],
            out_specs=[
                pl.BlockSpec((1, block_q, c), lambda i, j: (i, j, 0)),
                pl.BlockSpec((1, num_heads, block_q, m), lambda i, j: (i, 0, j, 0)),
            ],
        ),
        compiler_params=pltpu.CompilerParams(
            dimension_semantics=("parallel", "parallel"),
            vmem_limit_bytes=vmem_limit),
    )(xc, yc, wq_c, bq_h, wk_c, bk_h, wv_c, bv_h, wp_c, bp_f)

    if transpose_attention:
        # PyTorch layout (b, n, m, h).  NOTE: full extra HBM pass over the
        # attention tensor; consumers that accept (b, h, n, m) should pass
        # transpose_attention=False to keep the lane-dense kernel layout.
        attention = jnp.transpose(attn_bhnm, (0, 2, 3, 1))
    else:
        attention = attn_bhnm
    return out, attention


def _reference(x, y, params, num_heads):
    """Plain-JAX f32 reference mirroring the PyTorch forward, for validation."""
    wq, bq, wkv, bkv, wp, bp = params
    b, n, c = x.shape
    _, m, d = y.shape
    hd = c // num_heads
    scale = float(hd) ** (-0.5)
    q = (x @ wq + bq[0]).reshape(b, n, num_heads, hd)
    kv = (y @ wkv + bkv[0]).reshape(b, m, 2, num_heads, hd)
    k, v = kv[:, :, 0], kv[:, :, 1]
    att = jnp.einsum('bnhd,bmhd->bnmh', q, k) * scale
    att = jax.nn.softmax(att, axis=2)
    out = jnp.einsum('bnmh,bmhd->bnhd', att, v).reshape(b, n, c)
    out = out @ wp + bp[0]
    return out, att


if __name__ == "__main__":
    # Small shapes consistent with the module.
    batch, seq, dim_self, dim_ref, num_heads = 2, 8, 32, 32, 4

    key = jax.random.PRNGKey(0)
    kx, k1, k2, k3, k4, k5, k6 = jax.random.split(key, 7)

    x = jax.random.normal(kx, (batch, seq, dim_self), dtype=jnp.float32)

    # Deterministic synthetic parameters (stored as (in, out); biases as (1, out)).
    wq = 0.05 * jax.random.normal(k1, (dim_self, dim_self), dtype=jnp.float32)
    bq = 0.05 * jax.random.normal(k2, (1, dim_self), dtype=jnp.float32)
    wkv = 0.05 * jax.random.normal(k3, (dim_ref, 2 * dim_self), dtype=jnp.float32)
    bkv = 0.05 * jax.random.normal(k4, (1, 2 * dim_self), dtype=jnp.float32)
    wp = 0.05 * jax.random.normal(k5, (dim_self, dim_self), dtype=jnp.float32)
    bp = 0.05 * jax.random.normal(k6, (1, dim_self), dtype=jnp.float32)
    params = (wq, bq, wkv, bkv, wp, bp)

    out_ref, attn_ref = _reference(x, x, params, num_heads)

    # 1) f32-compute variant (exact reciprocal): tight correctness check.
    out32, attn32 = multi_head_attention(x, None, params, num_heads,
                                         compute_dtype=jnp.float32)
    out32 = jax.block_until_ready(out32)
    attn32 = jax.block_until_ready(attn32)
    np.testing.assert_allclose(np.asarray(out32), np.asarray(out_ref),
                               atol=1e-4, rtol=1e-4)
    np.testing.assert_allclose(np.asarray(attn32), np.asarray(attn_ref),
                               atol=1e-4, rtol=1e-4)

    # 2) fast default: bf16 MXU inputs, f32 accumulation, EUP approx reciprocal.
    out_bf, attn_bf = multi_head_attention(x, x, params, num_heads)
    out_bf = jax.block_until_ready(out_bf)
    attn_bf = jax.block_until_ready(attn_bf)
    assert out_bf.shape == (batch, seq, dim_self)
    assert attn_bf.shape == (batch, seq, seq, num_heads)
    np.testing.assert_allclose(np.asarray(out_bf), np.asarray(out_ref),
                               atol=2e-2, rtol=2e-2)
    np.testing.assert_allclose(np.asarray(attn_bf), np.asarray(attn_ref),
                               atol=2e-2, rtol=2e-2)

    print("KERNEL_OK")
</pallas_src>

<mosaic_0001>
module attributes {stable_mosaic.version = 11 : i64} {
  func.func @_mha_kernel(%arg0: i32, %arg1: i32, %arg2: memref<1x8x32xf32, #tpu.memory_space<vmem>>, %arg3: memref<1x8x32xf32, #tpu.memory_space<vmem>>, %arg4: memref<4x32x8xf32, #tpu.memory_space<vmem>>, %arg5: memref<4x1x8xf32, #tpu.memory_space<vmem>>, %arg6: memref<4x32x8xf32, #tpu.memory_space<vmem>>, %arg7: memref<4x1x8xf32, #tpu.memory_space<vmem>>, %arg8: memref<4x32x8xf32, #tpu.memory_space<vmem>>, %arg9: memref<4x1x8xf32, #tpu.memory_space<vmem>>, %arg10: memref<4x8x32xf32, #tpu.memory_space<vmem>>, %arg11: memref<1x32xf32, #tpu.memory_space<vmem>>, %arg12: memref<1x8x32xf32, #tpu.memory_space<vmem>>, %arg13: memref<1x4x8x8xf32, #tpu.memory_space<vmem>>) attributes {dimension_semantics = [#tpu.dimension_semantics<parallel>, #tpu.dimension_semantics<parallel>], iteration_bounds = array<i64: 2, 1>, scalar_prefetch = 0 : i64, scratch_operands = 0 : i64, tpu.core_type = #tpu.core_type<tc>, window_params = [{transform_indices = @transform_0, window_bounds = array<i64: 1, 8, 32>}, {transform_indices = @transform_1, window_bounds = array<i64: 1, 8, 32>}, {pipeline_mode = #tpu.pipeline_mode<synchronous>, transform_indices = @transform_2, window_bounds = array<i64: 4, 32, 8>}, {pipeline_mode = #tpu.pipeline_mode<synchronous>, transform_indices = @transform_3, window_bounds = array<i64: 4, 1, 8>}, {pipeline_mode = #tpu.pipeline_mode<synchronous>, transform_indices = @transform_4, window_bounds = array<i64: 4, 32, 8>}, {pipeline_mode = #tpu.pipeline_mode<synchronous>, transform_indices = @transform_5, window_bounds = array<i64: 4, 1, 8>}, {pipeline_mode = #tpu.pipeline_mode<synchronous>, transform_indices = @transform_6, window_bounds = array<i64: 4, 32, 8>}, {pipeline_mode = #tpu.pipeline_mode<synchronous>, transform_indices = @transform_7, window_bounds = array<i64: 4, 1, 8>}, {pipeline_mode = #tpu.pipeline_mode<synchronous>, transform_indices = @transform_8, window_bounds = array<i64: 4, 8, 32>}, {pipeline_mode = #tpu.pipeline_mode<synchronous>, transform_indices = @transform_9, window_bounds = array<i64: 1, 32>}, {transform_indices = @transform_10, window_bounds = array<i64: 1, 8, 32>}, {transform_indices = @transform_11, window_bounds = array<i64: 1, 4, 8, 8>}]} {
    %c0 = arith.constant 0 : index
    %c0_0 = arith.constant 0 : index
    %c0_1 = arith.constant 0 : index
    %0 = vector.load %arg2[%c0, %c0_0, %c0_1] : memref<1x8x32xf32, #tpu.memory_space<vmem>>, vector<1x8x32xf32>
    %1 = vector.shape_cast %0 : vector<1x8x32xf32> to vector<8x32xf32>
    %c0_2 = arith.constant 0 : index
    %c0_3 = arith.constant 0 : index
    %c0_4 = arith.constant 0 : index
    %2 = vector.load %arg3[%c0_2, %c0_3, %c0_4] : memref<1x8x32xf32, #tpu.memory_space<vmem>>, vector<1x8x32xf32>
    %3 = vector.shape_cast %2 : vector<1x8x32xf32> to vector<8x32xf32>
    %4 = vector.shape_cast %1 : vector<8x32xf32> to vector<1x8x32xf32>
    %5 = vector.shape_cast %4 : vector<1x8x32xf32> to vector<1x8x32xf32>
    %6 = vector.broadcast %5 : vector<1x8x32xf32> to vector<4x8x32xf32>
    %7 = vector.shape_cast %3 : vector<8x32xf32> to vector<1x8x32xf32>
    %8 = vector.shape_cast %7 : vector<1x8x32xf32> to vector<1x8x32xf32>
    %9 = vector.broadcast %8 : vector<1x8x32xf32> to vector<4x8x32xf32>
    %c0_5 = arith.constant 0 : index
    %c0_6 = arith.constant 0 : index
    %c0_7 = arith.constant 0 : index
    %10 = vector.load %arg4[%c0_5, %c0_6, %c0_7] : memref<4x32x8xf32, #tpu.memory_space<vmem>>, vector<4x32x8xf32>
    "tpu.trace_start"() <{level = 10 : i32, message = "hnc,hcd->hnd"}> : () -> ()
    %cst = arith.constant dense<0.000000e+00> : vector<4x8x8xf32>
    %11 = tpu.matmul %6, %10, %cst {dimension_numbers = #tpu.dot_dimension_numbers<[2], [1], [1], [2], [0, 0, 0, 1, 1, 2], [0], [0]>} : vector<4x8x32xf32>, vector<4x32x8xf32>, vector<4x8x8xf32> -> vector<4x8x8xf32>
    "tpu.trace_stop"() : () -> ()
    %c0_8 = arith.constant 0 : index
    %c0_9 = arith.constant 0 : index
    %c0_10 = arith.constant 0 : index
    %12 = vector.load %arg5[%c0_8, %c0_9, %c0_10] : memref<4x1x8xf32, #tpu.memory_space<vmem>>, vector<4x1x8xf32>
    %13 = vector.broadcast %12 : vector<4x1x8xf32> to vector<4x8x8xf32>
    %14 = arith.addf %11, %13 : vector<4x8x8xf32>
    %c0_11 = arith.constant 0 : index
    %c0_12 = arith.constant 0 : index
    %c0_13 = arith.constant 0 : index
    %15 = vector.load %arg6[%c0_11, %c0_12, %c0_13] : memref<4x32x8xf32, #tpu.memory_space<vmem>>, vector<4x32x8xf32>
    "tpu.trace_start"() <{level = 10 : i32, message = "hmc,hcd->hmd"}> : () -> ()
    %cst_14 = arith.constant dense<0.000000e+00> : vector<4x8x8xf32>
    %16 = tpu.matmul %9, %15, %cst_14 {dimension_numbers = #tpu.dot_dimension_numbers<[2], [1], [1], [2], [0, 0, 0, 1, 1, 2], [0], [0]>} : vector<4x8x32xf32>, vector<4x32x8xf32>, vector<4x8x8xf32> -> vector<4x8x8xf32>
    "tpu.trace_stop"() : () -> ()
    %c0_15 = arith.constant 0 : index
    %c0_16 = arith.constant 0 : index
    %c0_17 = arith.constant 0 : index
    %17 = vector.load %arg7[%c0_15, %c0_16, %c0_17] : memref<4x1x8xf32, #tpu.memory_space<vmem>>, vector<4x1x8xf32>
    %18 = vector.broadcast %17 : vector<4x1x8xf32> to vector<4x8x8xf32>
    %19 = arith.addf %16, %18 : vector<4x8x8xf32>
    %c0_18 = arith.constant 0 : index
    %c0_19 = arith.constant 0 : index
    %c0_20 = arith.constant 0 : index
    %20 = vector.load %arg8[%c0_18, %c0_19, %c0_20] : memref<4x32x8xf32, #tpu.memory_space<vmem>>, vector<4x32x8xf32>
    "tpu.trace_start"() <{level = 10 : i32, message = "hmc,hcd->hmd"}> : () -> ()
    %cst_21 = arith.constant dense<0.000000e+00> : vector<4x8x8xf32>
    %21 = tpu.matmul %9, %20, %cst_21 {dimension_numbers = #tpu.dot_dimension_numbers<[2], [1], [1], [2], [0, 0, 0, 1, 1, 2], [0], [0]>} : vector<4x8x32xf32>, vector<4x32x8xf32>, vector<4x8x8xf32> -> vector<4x8x8xf32>
    "tpu.trace_stop"() : () -> ()
    %c0_22 = arith.constant 0 : index
    %c0_23 = arith.constant 0 : index
    %c0_24 = arith.constant 0 : index
    %22 = vector.load %arg9[%c0_22, %c0_23, %c0_24] : memref<4x1x8xf32, #tpu.memory_space<vmem>>, vector<4x1x8xf32>
    %23 = vector.broadcast %22 : vector<4x1x8xf32> to vector<4x8x8xf32>
    %24 = arith.addf %21, %23 : vector<4x8x8xf32>
    "tpu.trace_start"() <{level = 10 : i32, message = "hnd,hmd->hnm"}> : () -> ()
    %cst_25 = arith.constant dense<0.000000e+00> : vector<4x8x8xf32>
    %25 = tpu.matmul %14, %19, %cst_25 {dimension_numbers = #tpu.dot_dimension_numbers<[2], [2], [1], [1], [0, 0, 0, 1, 1, 1], [0], [0]>} : vector<4x8x8xf32>, vector<4x8x8xf32>, vector<4x8x8xf32> -> vector<4x8x8xf32>
    "tpu.trace_stop"() : () -> ()
    %cst_26 = arith.constant dense<0xFF800000> : vector<4x8xf32>
    %26 = vector.multi_reduction <maximumf>, %25, %cst_26 [2] : vector<4x8x8xf32> to vector<4x8xf32>
    %27 = vector.shape_cast %26 : vector<4x8xf32> to vector<4x8x1xf32>
    %28 = vector.broadcast %27 : vector<4x8x1xf32> to vector<4x8x8xf32>
    %29 = arith.subf %25, %28 : vector<4x8x8xf32>
    %30 = math.exp %29 : vector<4x8x8xf32>
    %cst_27 = arith.constant dense<0.000000e+00> : vector<4x8xf32>
    %31 = vector.multi_reduction <add>, %30, %cst_27 [2] : vector<4x8x8xf32> to vector<4x8xf32>
    %32 = vector.shape_cast %31 : vector<4x8xf32> to vector<4x8x1xf32>
    %33 = tpu.reciprocal %32 : vector<4x8x1xf32> -> vector<4x8x1xf32>
    %34 = vector.broadcast %33 : vector<4x8x1xf32> to vector<4x8x8xf32>
    %35 = arith.mulf %30, %34 : vector<4x8x8xf32>
    %c0_28 = arith.constant 0 : index
    %c0_29 = arith.constant 0 : index
    %c0_30 = arith.constant 0 : index
    %c0_31 = arith.constant 0 : index
    %36 = vector.load %arg13[%c0_28, %c0_29, %c0_30, %c0_31] : memref<1x4x8x8xf32, #tpu.memory_space<vmem>>, vector<1x4x8x8xf32>
    %37 = vector.shape_cast %36 : vector<1x4x8x8xf32> to vector<4x8x8xf32>
    %38 = vector.shape_cast %35 : vector<4x8x8xf32> to vector<1x4x8x8xf32>
    tpu.vector_store %arg13[%c0_28, %c0_29, %c0_30, %c0_31], %38 {strides = array<i32>} : memref<1x4x8x8xf32, #tpu.memory_space<vmem>>, vector<1x4x8x8xf32>,
    "tpu.trace_start"() <{level = 10 : i32, message = "hnm,hmd->hnd"}> : () -> ()
    %cst_32 = arith.constant dense<0.000000e+00> : vector<4x8x8xf32>
    %39 = tpu.matmul %35, %24, %cst_32 {dimension_numbers = #tpu.dot_dimension_numbers<[2], [1], [1], [2], [0, 0, 0, 1, 1, 2], [0], [0]>} : vector<4x8x8xf32>, vector<4x8x8xf32>, vector<4x8x8xf32> -> vector<4x8x8xf32>
    "tpu.trace_stop"() : () -> ()
    %c0_33 = arith.constant 0 : index
    %c0_34 = arith.constant 0 : index
    %c0_35 = arith.constant 0 : index
    %40 = vector.load %arg10[%c0_33, %c0_34, %c0_35] : memref<4x8x32xf32, #tpu.memory_space<vmem>>, vector<4x8x32xf32>
    "tpu.trace_start"() <{level = 10 : i32, message = "hnd,hdc->hnc"}> : () -> ()
    %cst_36 = arith.constant dense<0.000000e+00> : vector<4x8x32xf32>
    %41 = tpu.matmul %39, %40, %cst_36 {dimension_numbers = #tpu.dot_dimension_numbers<[2], [1], [1], [2], [0, 0, 0, 1, 1, 2], [0], [0]>} : vector<4x8x8xf32>, vector<4x8x32xf32>, vector<4x8x32xf32> -> vector<4x8x32xf32>
    "tpu.trace_stop"() : () -> ()
    %cst_37 = arith.constant dense<0.000000e+00> : vector<8x32xf32>
    %42 = vector.multi_reduction <add>, %41, %cst_37 [0] : vector<4x8x32xf32> to vector<8x32xf32>
    %c0_38 = arith.constant 0 : index
    %c0_39 = arith.constant 0 : index
    %43 = vector.load %arg11[%c0_38, %c0_39] : memref<1x32xf32, #tpu.memory_space<vmem>>, vector<1x32xf32>
    %44 = vector.shape_cast %43 : vector<1x32xf32> to vector<32xf32>
    %45 = vector.shape_cast %44 : vector<32xf32> to vector<1x32xf32>
    %46 = vector.broadcast %45 : vector<1x32xf32> to vector<8x32xf32>
    %47 = arith.addf %42, %46 : vector<8x32xf32>
    %c0_40 = arith.constant 0 : index
    %c0_41 = arith.constant 0 : index
    %c0_42 = arith.constant 0 : index
    %48 = vector.load %arg12[%c0_40, %c0_41, %c0_42] : memref<1x8x32xf32, #tpu.memory_space<vmem>>, vector<1x8x32xf32>
    %49 = vector.shape_cast %48 : vector<1x8x32xf32> to vector<8x32xf32>
    %50 = vector.shape_cast %47 : vector<8x32xf32> to vector<1x8x32xf32>
    tpu.vector_store %arg12[%c0_40, %c0_41, %c0_42], %50 {strides = array<i32>} : memref<1x8x32xf32, #tpu.memory_space<vmem>>, vector<1x8x32xf32>,
    return
  }
  func.func @transform_0(%arg0: i32, %arg1: i32) -> (i32, i32, i32) {
    %c0_i32 = arith.constant 0 : i32
    %c0_i32_0 = arith.constant 0 : i32
    return %arg0, %arg1, %c0_i32 : i32, i32, i32
  }
  func.func @transform_1(%arg0: i32, %arg1: i32) -> (i32, i32, i32) {
    %c0_i32 = arith.constant 0 : i32
    %c0_i32_0 = arith.constant 0 : i32
    %c0_i32_1 = arith.constant 0 : i32
    return %arg0, %c0_i32, %c0_i32_0 : i32, i32, i32
  }
  func.func @transform_2(%arg0: i32, %arg1: i32) -> (i32, i32, i32) {
    %c0_i32 = arith.constant 0 : i32
    %c0_i32_0 = arith.constant 0 : i32
    %c0_i32_1 = arith.constant 0 : i32
    %c0_i32_2 = arith.constant 0 : i32
    return %c0_i32, %c0_i32_0, %c0_i32_1 : i32, i32, i32
  }
  func.func @transform_3(%arg0: i32, %arg1: i32) -> (i32, i32, i32) {
    %c0_i32 = arith.constant 0 : i32
    %c0_i32_0 = arith.constant 0 : i32
    %c0_i32_1 = arith.constant 0 : i32
    %c0_i32_2 = arith.constant 0 : i32
    return %c0_i32, %c0_i32_0, %c0_i32_1 : i32, i32, i32
  }
  func.func @transform_4(%arg0: i32, %arg1: i32) -> (i32, i32, i32) {
    %c0_i32 = arith.constant 0 : i32
    %c0_i32_0 = arith.constant 0 : i32
    %c0_i32_1 = arith.constant 0 : i32
    %c0_i32_2 = arith.constant 0 : i32
    return %c0_i32, %c0_i32_0, %c0_i32_1 : i32, i32, i32
  }
  func.func @transform_5(%arg0: i32, %arg1: i32) -> (i32, i32, i32) {
    %c0_i32 = arith.constant 0 : i32
    %c0_i32_0 = arith.constant 0 : i32
    %c0_i32_1 = arith.constant 0 : i32
    %c0_i32_2 = arith.constant 0 : i32
    return %c0_i32, %c0_i32_0, %c0_i32_1 : i32, i32, i32
  }
  func.func @transform_6(%arg0: i32, %arg1: i32) -> (i32, i32, i32) {
    %c0_i32 = arith.constant 0 : i32
    %c0_i32_0 = arith.constant 0 : i32
    %c0_i32_1 = arith.constant 0 : i32
    %c0_i32_2 = arith.constant 0 : i32
    return %c0_i32, %c0_i32_0, %c0_i32_1 : i32, i32, i32
  }
  func.func @transform_7(%arg0: i32, %arg1: i32) -> (i32, i32, i32) {
    %c0_i32 = arith.constant 0 : i32
    %c0_i32_0 = arith.constant 0 : i32
    %c0_i32_1 = arith.constant 0 : i32
    %c0_i32_2 = arith.constant 0 : i32
    return %c0_i32, %c0_i32_0, %c0_i32_1 : i32, i32, i32
  }
  func.func @transform_8(%arg0: i32, %arg1: i32) -> (i32, i32, i32) {
    %c0_i32 = arith.constant 0 : i32
    %c0_i32_0 = arith.constant 0 : i32
    %c0_i32_1 = arith.constant 0 : i32
    %c0_i32_2 = arith.constant 0 : i32
    return %c0_i32, %c0_i32_0, %c0_i32_1 : i32, i32, i32
  }
  func.func @transform_9(%arg0: i32, %arg1: i32) -> (i32, i32) {
    %c0_i32 = arith.constant 0 : i32
    %c0_i32_0 = arith.constant 0 : i32
    %c0_i32_1 = arith.constant 0 : i32
    return %c0_i32, %c0_i32_0 : i32, i32
  }
  func.func @transform_10(%arg0: i32, %arg1: i32) -> (i32, i32, i32) {
    %c0_i32 = arith.constant 0 : i32
    %c0_i32_0 = arith.constant 0 : i32
    return %arg0, %arg1, %c0_i32 : i32, i32, i32
  }
  func.func @transform_11(%arg0: i32, %arg1: i32) -> (i32, i32, i32, i32) {
    %c0_i32 = arith.constant 0 : i32
    %c0_i32_0 = arith.constant 0 : i32
    %c0_i32_1 = arith.constant 0 : i32
    return %arg0, %c0_i32, %arg1, %c0_i32_0 : i32, i32, i32, i32
  }
}

</mosaic_0001>

<bundles_post_ra>
// kernel: tpu_custom_call.1
= control target key start
LH: loop header
LB: loop body
LE: loop exit
PB: predicated region body
PF: predicated region fallthrough
CT: control target
= control target key end

     0   :  { %17 = vsyncpa [#allocation3], 0  ;;  %s3698_s0 = inlined_call_operand.vmem [shape: f32[2,8,32], index: 0, kind: input, shape index: {}]   ;;  %s3699_s1 = inlined_call_operand.vmem [shape: f32[2,8,32], index: 1, kind: input, shape index: {}]   ;;  %s3700_s2 = inlined_call_operand.vmem [shape: f32[4,32,8], index: 2, kind: input, shape index: {}]   ;;  %s3701_s3 = inlined_call_operand.vmem [shape: f32[4,1,8], index: 3, kind: input, shape index: {}]   ;;  %s3702_s4 = inlined_call_operand.vmem [shape: f32[4,32,8], index: 4, kind: input, shape index: {}]   ;;  %s3703_s5 = inlined_call_operand.vmem [shape: f32[4,1,8], index: 5, kind: input, shape index: {}]   ;;  %s3704_s6 = inlined_call_operand.vmem [shape: f32[4,32,8], index: 6, kind: input, shape index: {}]   ;;  %s3705_s7 = inlined_call_operand.vmem [shape: f32[4,1,8], index: 7, kind: input, shape index: {}]   ;;  %s3706_s8 = inlined_call_operand.vmem [shape: f32[4,8,32], index: 8, kind: input, shape index: {}]   ;;  %s3707_s9 = inlined_call_operand.vmem [shape: f32[1,32], index: 9, kind: input, shape index: {}]   ;;  %s3708_s10 = inlined_call_operand.hbm [shape: f32[2,8,32], index: 10, kind: output, shape index: {0}]   ;;  %s3709_s11 = inlined_call_operand.hbm [shape: f32[2,4,8,8], index: 11, kind: output, shape index: {1}]  }
   0x1   :  { %19 = vsyncpa [#allocation3 + $0x1], 0 }
   0x2   :  { %20 = vsyncpa [#allocation5], 0 }
   0x3   :  { %22 = vsyncpa [#allocation5 + $0x1], 0  ;;  %s3195_s17 = smov 0   ;;  %s3197_s18 = smov 0  }
   0x4   :  { %s3199_s19 = smov 0   ;;  %s3201_s20 = smov 0  }
   0x5   :  { %s3203_s21 = smov 0   ;;  %s3205_s22 = smov 0  }
   0x6 LB: > { %3712 = sst [smem:[#allocation8_spill]] %s3122_s21  ;;  %s2529_s23 = sadd.s32 4294967295, %s3126_s22   ;;  %s3126_s22 = sphi %s3205_s22, %s28_s22   ;;  %s3122_s21 = sphi %s3203_s21, %s3719_s21   ;;  %s3118_s20 = sphi %s3201_s20, %s3718_s20   ;;  %s3114_s19 = sphi %s3199_s19, %s3722_s19   ;;  %s3110_s18 = sphi %s3197_s18, %s3721_s18   ;;  %s3106_s17 = sphi %s3195_s17, %s3720_s17  }
   0x7   : > { %s2530_s24 = sadd.s32 4294967294, %s3126_s22   ;;  %s40_s25 = sadd.s32 1, %s3122_s21 }
   0x8   : > { %s271_s26 = sadd.s32 1, %s3114_s19  ;;  %p42_p0 = scmp.ge.s32.totalorder %s40_s25, 2 }
   0x9   : > { %p281_p1 = scmp.ne.s32.totalorder %s3114_s19, %s3110_s18  ;;  %p282_p2 = scmp.eq.s32.totalorder %s2529_s23, 1 }
   0xa   : > { %p287_p3 = scmp.ne.s32.totalorder %s3110_s18, %s3106_s17  ;;  %s3724_s25 = smov (%p42_p0, %s40_s25), 0 }
   0xb   : > { %3713 = sst [smem:[#allocation9_spill]] %s3724_s25  ;;  %p3235_p4 = por %p282_p2, %p281_p1 }
   0xc   : > { %p288_p5 = scmp.eq.s32.totalorder %s2530_s24, 1  ;;  %s266_s28 = ssub.s32 %s3122_s21, %s3724_s25 }
   0xd   : > { %p2533_p6 = scmp.ge.s32.totalorder %s3126_s22, 1  ;;  %p269_p7 = scmp.eq.s32.totalorder %s266_s28, 0 }
   0xe   : > { %p3242_p8 = por %p288_p5, %p287_p3  ;;  %p375_p9 = scmp.lt.s32.totalorder %s3126_s22, 3 }
   0xf   : > { %s3248_s30 = scalar_select %p269_p7, %s3114_s19, %s271_s26  }
  0x10   : > { %p376_p10 = pnand %p2533_p6, %p375_p9 }
  0x11   : > { %3716 = sst [smem:[#allocation10_spill]] %s3248_s30  ;;  %v439_v0 = vld [vmem:[%s3700_s2] sm:$0xff] (!%p376_p10)  ;;  %v440_v1 = vld [vmem:[%s3700_s2 + $0x8] sm:$0xff] (!%p376_p10)  ;;  %v3128_v3 = vmov (!%p376_p10), 0.0|0.0   ;;  %v441_v6 = vld [vmem:[%s3700_s2 + $0x10] sm:$0xff] (!%p376_p10)  ;;  %p426_p11 = scmp.lt.s32.totalorder (!%p376_p10), %s3118_s20, 1 }
  0x12   : > { %379 = sbr.rel (%p376_p10) target bundleno = 1244 (0x4dc), region = 60  ;;  %v443_v2 = vld [vmem:[%s3700_s2 + $0x20] sm:$0xff] (!%p376_p10)  ;;  %2863 = vmatprep.subr.bf16.mxu0 (!%p376_p10), %v3128_v3  ;;  %2869 = vmatprep.subr.bf16.mxu1 (!%p376_p10), %v3128_v3  ;;  %v2864_v4 = vpack.c.bf16 (!%p376_p10), %v440_v1, %v439_v0  ;;  %v444_v5 = vld [vmem:[%s3700_s2 + $0x28] sm:$0xff] (!%p376_p10)  ;;  %v442_v7 = vld [vmem:[%s3700_s2 + $0x18] sm:$0xff] (!%p376_p10)  ;;  %vm3129_vm0 = vmmov (!%p376_p10), 0   ;;  %v3130_v11 = vmov (!%p376_p10), 0.0  }
  0x13   : > { %v2870_v8 = vpack.c.bf16 (!%p376_p10), %v444_v5, %v443_v2  ;;  %v445_v9 = vld [vmem:[%s3700_s2 + $0x30] sm:$0xff] (!%p376_p10)  ;;  %v446_v10 = vld [vmem:[%s3700_s2 + $0x38] sm:$0xff] (!%p376_p10)  ;;  %2679 = vmatprep.mubr.msk.f32.mxu0 (!%p376_p10), %vm3129_vm0, %v3130_v11  ;;  %2690 = vmatprep.mubr.msk.f32.mxu1 (!%p376_p10), %vm3129_vm0, %v3130_v11  ;;  %v2867_v12 = vpack.c.bf16 (!%p376_p10), %v442_v7, %v441_v6  ;;  %v447_v14 = vld [vmem:[%s3700_s2 + $0x40] sm:$0xff] (!%p376_p10)  ;;  %vm483_vm1 = vcmask (!%p376_p10), 261120   ;;  %vm1418_vm2 = vcmask (!%p376_p10), 64512   ;;  %s3548_s14 = sand.u32 (!%p376_p10), 1, %s3110_s18  }
  0x14   : > { %2865 = vmatpush3.bf16.msra.mxu0 (!%p376_p10), %v2864_v4  ;;  %v2873_v13 = vpack.c.bf16 (!%p376_p10), %v446_v10, %v445_v9  ;;  %v448_v15 = vld [vmem:[%s3700_s2 + $0x48] sm:$0xff] (!%p376_p10)  ;;  %v451_v16 = vld [vmem:[%s3700_s2 + $0x60] sm:$0xff] (!%p376_p10)  ;;  %v449_v21 = vld [vmem:[%s3700_s2 + $0x50] sm:$0xff] (!%p376_p10)  ;;  %s2535_s21 = sshll.u32 (!%p376_p10), %s3548_s14, 5 }
  0x15   : > { %2871 = vmatpush3.bf16.msra.mxu1 (!%p376_p10), %v2870_v8  ;;  %2866 = vmatprep.subr.bf16.mxu0 (!%p376_p10), %v3128_v3  ;;  %v452_v17 = vld [vmem:[%s3700_s2 + $0x68] sm:$0xff] (!%p376_p10)  ;;  %v2876_v19 = vpack.c.bf16 (!%p376_p10), %v448_v15, %v447_v14  ;;  %v450_v22 = vld [vmem:[%s3700_s2 + $0x58] sm:$0xff] (!%p376_p10)  ;;  %v453_v23 = vld [vmem:[%s3700_s2 + $0x70] sm:$0xff] (!%p376_p10) }
  0x16   : > { %2872 = vmatprep.subr.bf16.mxu1 (!%p376_p10), %v3128_v3  ;;  %v2882_v20 = vpack.c.bf16 (!%p376_p10), %v452_v17, %v451_v16  ;;  %v454_v24 = vld [vmem:[%s3700_s2 + $0x78] sm:$0xff] (!%p376_p10)  ;;  %v2879_v25 = vpack.c.bf16 (!%p376_p10), %v450_v22, %v449_v21  ;;  %v767_v27 = vld [vmem:[%s3702_s4] sm:$0xff] (!%p376_p10)  ;;  %v768_v28 = vld [vmem:[%s3702_s4 + $0x8] sm:$0xff] (!%p376_p10) }
  0x17   : > { %v2885_v26 = vpack.c.bf16 (!%p376_p10), %v454_v24, %v453_v23  ;;  %v771_v29 = vld [vmem:[%s3702_s4 + $0x20] sm:$0xff] (!%p376_p10)  ;;  %v772_v30 = vld [vmem:[%s3702_s4 + $0x28] sm:$0xff] (!%p376_p10)  ;;  %v2888_v31 = vpack.c.bf16 (!%p376_p10), %v768_v28, %v767_v27  ;;  %v769_v33 = vld [vmem:[%s3702_s4 + $0x10] sm:$0xff] (!%p376_p10) }
  0x18   : > { %2868 = vmatpush3.bf16.msra.mxu0 (!%p376_p10), %v2867_v12  ;;  %v2894_v32 = vpack.c.bf16 (!%p376_p10), %v772_v30, %v771_v29  ;;  %v770_v34 = vld [vmem:[%s3702_s4 + $0x18] sm:$0xff] (!%p376_p10)  ;;  %v773_v35 = vld [vmem:[%s3702_s4 + $0x30] sm:$0xff] (!%p376_p10)  ;;  %v775_v39 = vld [vmem:[%s3702_s4 + $0x40] sm:$0xff] (!%p376_p10) }
  0x19   : > { %s3282_s24 = scalar_select %p426_p11, %s3118_s20, 1  ;;  %2874 = vmatpush3.bf16.msra.mxu1 %v2873_v13  ;;  %2875 = vmatprep.subr.bf16.mxu0 %v3128_v3  ;;  %v774_v36 = vld [vmem:[%s3702_s4 + $0x38] sm:$0xff]  ;;  %v2891_v37 = vpack.c.bf16 %v770_v34, %v769_v33  ;;  %v776_v40 = vld [vmem:[%s3702_s4 + $0x48] sm:$0xff]  ;;  %v779_v41 = vld [vmem:[%s3702_s4 + $0x60] sm:$0xff] }
  0x1a   : > { %2881 = vmatprep.subr.bf16.mxu1 %v3128_v3  ;;  %v2897_v38 = vpack.c.bf16 %v774_v36, %v773_v35  ;;  %v780_v42 = vld [vmem:[%s3702_s4 + $0x68] sm:$0xff]  ;;  %v2900_v44 = vpack.c.bf16 %v776_v40, %v775_v39  ;;  %v777_v46 = vld [vmem:[%s3702_s4 + $0x50] sm:$0xff]  ;;  %v778_v47 = vld [vmem:[%s3702_s4 + $0x58] sm:$0xff] }
  0x1b   : > { %s2536_s13 = sshll.u32 %s3282_s24, 3  ;;  %v2906_v45 = vpack.c.bf16 %v780_v42, %v779_v41  ;;  %v781_v48 = vld [vmem:[%s3702_s4 + $0x70] sm:$0xff]  ;;  %v782_v49 = vld [vmem:[%s3702_s4 + $0x78] sm:$0xff]  ;;  %v2903_v50 = vpack.c.bf16 %v778_v47, %v777_v46  ;;  %v1094_v52 = vld [vmem:[%s3704_s6] sm:$0xff] }
  0x1c   : > { %s432_s25 = scalar_lea.vmem %s3698_s0, %s2536_s13  ;;  %s436_s15 = scalar_lea.vmem %s3699_s1, %s2536_s13  ;;  %v2909_v51 = vpack.c.bf16 %v782_v49, %v781_v48  ;;  %v1095_v53 = vld [vmem:[%s3704_s6 + $0x8] sm:$0xff]  ;;  %v1098_v54 = vld [vmem:[%s3704_s6 + $0x20] sm:$0xff]  ;;  %v1096_v58 = vld [vmem:[%s3704_s6 + $0x10] sm:$0xff] }
  0x1d   : > { %v437_v18 = vld [vmem:[%s432_s25] sm:$0xff]  ;;  %v1099_v55 = vld [vmem:[%s3704_s6 + $0x28] sm:$0xff]  ;;  %v2912_v56 = vpack.c.bf16 %v1095_v53, %v1094_v52  ;;  %v1097_v59 = vld [vmem:[%s3704_s6 + $0x18] sm:$0xff]  ;;  %s2586_s25 = sshll.u32 %s3118_s20, 9  ;;  %s2381_s13 = scalar_lea.sflag [#allocation5], %s3548_s14 }
  0x1e   : > { %2680 = vmatmul.mubr.msk.f32.vlgmr.msra.gmra.mrb[0].mxu0 %vm483_vm1, %v437_v18  ;;  %2691 = vmatmul.mubr.msk.f32.vlgmr.msra.gmra.mrb[0].mxu1 %vm483_vm1, %v437_v18  ;;  %v3377_v43 = vld [vmem:[%s436_s15] sm:$0xff]  ;;  %v2918_v57 = vpack.c.bf16 %v1099_v55, %v1098_v54  ;;  %v1100_v60 = vld [vmem:[%s3704_s6 + $0x30] sm:$0xff]  ;;  %v2915_v61 = vpack.c.bf16 %v1097_v59, %v1096_v58  ;;  %v1101_v62 = vld [vmem:[%s3704_s6 + $0x38] sm:$0xff]  ;;  %s3558_s15 = scalar_lea.vmem [#allocation4], %s2535_s21  ;;  %s3611_s28 = scalar_lea.hbm %s3709_s11, %s2586_s25 }
  0x1f   : > { %2877 = vmatpush3.bf16.msra.mxu0 %v2876_v19  ;;  %2883 = vmatpush3.bf16.msra.mxu1 %v2882_v20  ;;  %v2921_v63 = vpack.c.bf16 %v1101_v62, %v1100_v60  ;;  %v1102_v0 = vld [vmem:[%s3704_s6 + $0x40] sm:$0xff]  ;;  %v1103_v1 = vld [vmem:[%s3704_s6 + $0x48] sm:$0xff]  ;;  %v1104_v7 = vld [vmem:[%s3704_s6 + $0x50] sm:$0xff]  ;;  %s2409_s23 = sshll.u32 %s3558_s15, 4  ;;  %s3131_s21 = smov [#allocation4]   ;;  %s3606_s23 = int_to_ptr.vmem [resolvable:$true] %s2409_s23 }
  0x20   : > { %2878 = vmatprep.subr.bf16.mxu0 %v3128_v3  ;;  %2884 = vmatprep.subr.bf16.mxu1 %v3128_v3  ;;  %v1106_v2 = vld [vmem:[%s3704_s6 + $0x60] sm:$0xff]  ;;  %v2924_v4 = vpack.c.bf16 %v1103_v1, %v1102_v0  ;;  %v1107_v5 = vld [vmem:[%s3704_s6 + $0x68] sm:$0xff]  ;;  %v1105_v8 = vld [vmem:[%s3704_s6 + $0x58] sm:$0xff]  ;;  %s3016_s12 = scalar_lea.vmem %s3606_s23, 512  ;;  %s3020_s30 = sshll.u32 %s3131_s21, 4  ;;  %s3021_s30 = int_to_ptr.vmem [resolvable:$false] %s3020_s30 }
  0x21   : > { %2701 = vmatprep.mubr.msk.f32.mxu0 %vm3129_vm0, %v3130_v11  ;;  %2712 = vmatprep.mubr.msk.f32.mxu1 %vm3129_vm0, %v3130_v11  ;;  %v2930_v6 = vpack.c.bf16 %v1107_v5, %v1106_v2  ;;  %v1108_v9 = vld [vmem:[%s3704_s6 + $0x70] sm:$0xff]  ;;  %v2927_v10 = vpack.c.bf16 %v1105_v8, %v1104_v7  ;;  %v1109_v12 = vld [vmem:[%s3704_s6 + $0x78] sm:$0xff]  ;;  %v2546_v21 = vld [vmem:[%s3703_s5] ss:$0 sm:$0xff]  ;;  %p3017_p12 = scmp.ne.s32.totalorder %s3606_s23, %s3016_s12  ;;  %p3023_p1 = scmp.lt.s32.totalorder %s3606_s23, %s3021_s30 }
  0x22   : > { %v2933_v13 = vpack.c.bf16 %v1109_v12, %v1108_v9  ;;  %v2547_v22 = vld [vmem:[%s3703_s5 + $0x1] ss:$0 sm:$0xff]  ;;  %v2538_v24 = vld [vmem:[%s3701_s3] ss:$0 sm:$0xff]  ;;  %v2548_v33 = vld [vmem:[%s3703_s5 + $0x2] ss:$0 sm:$0xff] }
  0x23   : > { %2880 = vmatpush3.bf16.msra.mxu0 %v2879_v25  ;;  %2886 = vmatpush3.bf16.msra.mxu1 %v2885_v26  ;;  %v2539_v28 = vld [vmem:[%s3701_s3 + $0x1] ss:$0 sm:$0xff]  ;;  %v2549_v34 = vld [vmem:[%s3703_s5 + $0x3] ss:$0 sm:$0xff]  ;;  %v2540_v36 = vld [vmem:[%s3701_s3 + $0x2] ss:$0 sm:$0xff]  ;;  %p3018_p13 = pnand %p3017_p12, %p3235_p4 }
  0x24   : > { %2887 = vmatprep.subr.bf16.mxu0 %v3128_v3  ;;  %2893 = vmatprep.subr.bf16.mxu1 %v3128_v3  ;;  %v2541_v40 = vld [vmem:[%s3701_s3 + $0x3] ss:$0 sm:$0xff]  ;;  %v2555_v46 = vld [vmem:[%s3705_s7 + $0x1] ss:$0 sm:$0xff] }
  0x25   : > { %p3019_p0 = pneg %p3018_p13 }
  0x26   : > { %2702 = vmatmul.mubr.msk.f32.vlgmr.msra.gmra.mrb[2].mxu0 %vm483_vm1, %v437_v18  ;;  %2713 = vmatmul.mubr.msk.f32.vlgmr.msra.gmra.mrb[2].mxu1 %vm483_vm1, %v437_v18 }
  0x27   : > { %2889 = vmatpush3.bf16.msra.mxu0 %v2888_v31  ;;  %2895 = vmatpush3.bf16.msra.mxu1 %v2894_v32 }
  0x28   : > { %2890 = vmatprep.subr.bf16.mxu0 %v3128_v3  ;;  %2896 = vmatprep.subr.bf16.mxu1 %v3128_v3 }
  0x29   : > { %2723 = vmatprep.mubr.msk.f32.mxu0 %vm3129_vm0, %v3130_v11  ;;  %2734 = vmatprep.mubr.msk.f32.mxu1 %vm3129_vm0, %v3130_v11 }
  0x2b   : > { %2892 = vmatpush3.bf16.msra.mxu0 %v2891_v37  ;;  %2898 = vmatpush3.bf16.msra.mxu1 %v2897_v38 }
  0x2c   : > { %2899 = vmatprep.subr.bf16.mxu0 %v3128_v3  ;;  %2905 = vmatprep.subr.bf16.mxu1 %v3128_v3 }
  0x2e   : > { %2724 = vmatmul.mubr.msk.f32.vlgmr.msra.gmra.mrb[4].mxu0 %vm483_vm1, %v3377_v43  ;;  %2735 = vmatmul.mubr.msk.f32.vlgmr.msra.gmra.mrb[4].mxu1 %vm483_vm1, %v3377_v43 }
  0x2f   : > { %2901 = vmatpush3.bf16.msra.mxu0 %v2900_v44  ;;  %2907 = vmatpush3.bf16.msra.mxu1 %v2906_v45  ;;  %v2554_v45 = vld [vmem:[%s3705_s7] ss:$0 sm:$0xff] }
  0x30   : > { %2902 = vmatprep.subr.bf16.mxu0 %v3128_v3  ;;  %2908 = vmatprep.subr.bf16.mxu1 %v3128_v3 }
  0x31   : > { %2745 = vmatprep.mubr.msk.f32.mxu0 %vm3129_vm0, %v3130_v11  ;;  %2756 = vmatprep.mubr.msk.f32.mxu1 %vm3129_vm0, %v3130_v11 }
  0x33   : > { %2904 = vmatpush3.bf16.msra.mxu0 %v2903_v50  ;;  %2910 = vmatpush3.bf16.msra.mxu1 %v2909_v51 }
  0x34   : > { %2911 = vmatprep.subr.bf16.mxu0 %v3128_v3  ;;  %2917 = vmatprep.subr.bf16.mxu1 %v3128_v3 }
  0x36   : > { %2746 = vmatmul.mubr.msk.f32.vlgmr.msra.gmra.mrb[6].mxu0 %vm483_vm1, %v3377_v43  ;;  %2757 = vmatmul.mubr.msk.f32.vlgmr.msra.gmra.mrb[6].mxu1 %vm483_vm1, %v3377_v43 }
  0x37   : > { %2913 = vmatpush3.bf16.msra.mxu0 %v2912_v56  ;;  %2919 = vmatpush3.bf16.msra.mxu1 %v2918_v57 }
  0x38   : > { %2914 = vmatprep.subr.bf16.mxu0 %v3128_v3  ;;  %2920 = vmatprep.subr.bf16.mxu1 %v3128_v3 }
  0x39   : > { %2767 = vmatprep.mubr.msk.f32.mxu0 %vm3129_vm0, %v3130_v11  ;;  %2778 = vmatprep.mubr.msk.f32.mxu1 %vm3129_vm0, %v3130_v11 }
  0x3b   : > { %2916 = vmatpush3.bf16.msra.mxu0 %v2915_v61  ;;  %2922 = vmatpush3.bf16.msra.mxu1 %v2921_v63 }
  0x3c   : > { %2923 = vmatprep.subr.bf16.mxu0 %v3128_v3  ;;  %2929 = vmatprep.subr.bf16.mxu1 %v3128_v3 }
  0x3e   : > { %2768 = vmatmul.mubr.msk.f32.vlgmr.msra.gmra.mrb[8].mxu0 %vm483_vm1, %v3377_v43  ;;  %2779 = vmatmul.mubr.msk.f32.vlgmr.msra.gmra.mrb[8].mxu1 %vm483_vm1, %v3377_v43 }
  0x3f   : > { %2925 = vmatpush3.bf16.msra.mxu0 %v2924_v4  ;;  %2931 = vmatpush3.bf16.msra.mxu1 %v2930_v6 }
  0x40   : > { %2926 = vmatprep.subr.bf16.mxu0 %v3128_v3  ;;  %2932 = vmatprep.subr.bf16.mxu1 %v3128_v3 }
  0x41   : > { %2789 = vmatprep.mubr.msk.f32.mxu0 %vm3129_vm0, %v3130_v11  ;;  %2800 = vmatprep.mubr.msk.f32.mxu1 %vm3129_vm0, %v3130_v11 }
  0x43   : > { %2928 = vmatpush3.bf16.msra.mxu0 %v2927_v10  ;;  %2934 = vmatpush3.bf16.msra.mxu1 %v2933_v13 }
  0x44   : > { %2803 = vmatprep.subr.mxu0 %v3130_v11  ;;  %2808 = vmatprep.subr.mxu1 %v3130_v11 }
  0x46   : > { %2790 = vmatmul.mubr.msk.f32.vlgmr.msra.gmra.mrb[10].mxu0 %vm483_vm1, %v3377_v43  ;;  %2801 = vmatmul.mubr.msk.f32.vlgmr.msra.gmra.mrb[10].mxu1 %vm483_vm1, %v3377_v43 }
  0x47   : > { %2805 = vmatprep.mubr.msk.f32.mxu0 %vm3129_vm0, %v3130_v11  ;;  %2810 = vmatprep.mubr.msk.f32.mxu1 %vm3129_vm0, %v3130_v11 }
  0xf1   : > { %v553_v3 = vpop.f32.mrb[0].mxu0  ;;  %v623_v15 = vpop.f32.mrb[0].mxu1 }
  0xf2   : > { %v2681_v14 = vpop.f32.mrb[1].mxu0  ;;  %v2692_v16 = vpop.f32.mrb[1].mxu1  ;;  %v554_v31 = vadd.f32 %v2538_v24, %v553_v3  ;;  %v624_v32 = vadd.f32 %v2539_v28, %v623_v15 }
  0xf9   : > { %v693_v17 = vpop.f32.mrb[2].mxu0  ;;  %v763_v19 = vpop.f32.mrb[2].mxu1 }
  0xfa   : > { %v2703_v18 = vpop.f32.mrb[3].mxu0  ;;  %v2714_v20 = vpop.f32.mrb[3].mxu1  ;;  %v694_v43 = vadd.f32 %v2540_v36, %v693_v17  ;;  %v764_v44 = vadd.f32 %v2541_v40, %v763_v19 }
 0x101   : > { %v880_v23 = vpop.f32.mrb[4].mxu0  ;;  %v950_v26 = vpop.f32.mrb[4].mxu1 }
 0x102   : > { %v881_v25 = vadd.f32 %v2546_v21, %v880_v23  ;;  %v2725_v27 = vpop.f32.mrb[5].mxu0  ;;  %v951_v29 = vadd.f32 %v2547_v22, %v950_v26  ;;  %v2736_v30 = vpop.f32.mrb[5].mxu1 }
 0x104   : > { %2804 = vmatpush3.xpose.msk.msra.mxu0 %vm1418_vm2, %v881_v25  ;;  %2809 = vmatpush3.xpose.msk.msra.mxu1 %vm1418_vm2, %v951_v29  ;;  %v2556_v29 = vld [vmem:[%s3705_s7 + $0x2] ss:$0 sm:$0xff] }
 0x105   : > { %2813 = vmatprep.subr.mxu0 %v3130_v11  ;;  %2818 = vmatprep.subr.mxu1 %v3130_v11 }
 0x107   : > { %2806 = vmatmul.mubr.msk.f32.vlgmr.msra.gmra.mrb[12].mxu0 %vm1418_vm2, %v554_v31  ;;  %2811 = vmatmul.mubr.msk.f32.vlgmr.msra.gmra.mrb[12].mxu1 %vm1418_vm2, %v624_v32 }
 0x108   : > { %2815 = vmatprep.mubr.msk.f32.mxu0 %vm3129_vm0, %v3130_v11  ;;  %2820 = vmatprep.mubr.msk.f32.mxu1 %vm3129_vm0, %v3130_v11 }
 0x109   : > { %v1020_v35 = vpop.f32.mrb[6].mxu0  ;;  %v1090_v38 = vpop.f32.mrb[6].mxu1 }
 0x10a   : > { %v1021_v37 = vadd.f32 %v2548_v33, %v1020_v35  ;;  %v2747_v39 = vpop.f32.mrb[7].mxu0  ;;  %v1091_v41 = vadd.f32 %v2549_v34, %v1090_v38  ;;  %v2758_v42 = vpop.f32.mrb[7].mxu1  ;;  %v2557_v34 = vld [vmem:[%s3705_s7 + $0x3] ss:$0 sm:$0xff] }
 0x10b   : > { %v2063_v42 = vld [vmem:[%s3706_s8] sm:$0xff] }
 0x10c   : > { %2814 = vmatpush3.xpose.msk.msra.mxu0 %vm1418_vm2, %v1021_v37  ;;  %2819 = vmatpush3.xpose.msk.msra.mxu1 %vm1418_vm2, %v1091_v41 }
 0x10d   : > { %2823 = vmatprep.subr.mxu0 %v3130_v11  ;;  %2828 = vmatprep.subr.mxu1 %v3130_v11 }
 0x10f   : > { %2816 = vmatmul.mubr.msk.f32.vlgmr.msra.gmra.mrb[14].mxu0 %vm1418_vm2, %v694_v43  ;;  %2821 = vmatmul.mubr.msk.f32.vlgmr.msra.gmra.mrb[14].mxu1 %vm1418_vm2, %v764_v44  ;;  %v2064_v43 = vld [vmem:[%s3706_s8 + $0x8] sm:$0xff]  ;;  %v2065_v44 = vld [vmem:[%s3706_s8 + $0x10] sm:$0xff] }
 0x110   : > { %2825 = vmatprep.mubr.msk.f32.mxu0 %vm3129_vm0, %v3130_v11  ;;  %2830 = vmatprep.mubr.msk.f32.mxu1 %vm3129_vm0, %v3130_v11 }
 0x111   : > { %v1204_v47 = vpop.f32.mrb[8].mxu0  ;;  %v1274_v50 = vpop.f32.mrb[8].mxu1 }
 0x112   : > { %v1205_v48 = vadd.f32 %v2554_v45, %v1204_v47  ;;  %v2769_v49 = vpop.f32.mrb[9].mxu0  ;;  %v1275_v51 = vadd.f32 %v2555_v46, %v1274_v50  ;;  %v2780_v52 = vpop.f32.mrb[9].mxu1  ;;  %v2066_v47 = vld [vmem:[%s3706_s8 + $0x18] sm:$0xff] }
 0x114   : > { %2824 = vmatpush3.msra.mxu0 %v1205_v48  ;;  %2829 = vmatpush3.msra.mxu1 %v1275_v51 }
 0x115   : > { %2833 = vmatprep.subr.mxu0 %v3130_v11  ;;  %2838 = vmatprep.subr.mxu1 %v3130_v11 }
 0x119   : > { %v1344_v53 = vpop.f32.mrb[10].mxu0  ;;  %v3537_v54 = vpop.f32.mrb[10].mxu1 }
 0x11a   : > { %v2791_v55 = vpop.f32.mrb[11].mxu0  ;;  %v2802_v56 = vpop.f32.mrb[11].mxu1  ;;  %v1345_v33 = vadd.f32 %v2556_v29, %v1344_v53  ;;  %v1415_v37 = vadd.f32 %v2557_v34, %v3537_v54 }
 0x1da   : > { %v1491_v57 = vpop.f32.mrb[12].mxu0  ;;  %v1567_v58 = vpop.f32.mrb[12].mxu1 }
 0x1db   : > { %v2807_v59 = vpop.f32.mrb[13].mxu0  ;;  %v1723_v60 = vsel %vm1418_vm2, %v1491_v57, -inf  ;;  %v2812_v61 = vpop.f32.mrb[13].mxu1  ;;  %v1726_v62 = vsel %vm1418_vm2, %v1567_v58, -inf }
 0x1dc   : > { %1724 = vmax.xlane.f32.xlu0 %v1723_v60 }
 0x1e0   : > { %1727 = vmax.xlane.f32.xlu0 %v1726_v62 }
 0x1e2   : > { %v1643_v63 = vpop.f32.mrb[14].mxu0  ;;  %v1719_v0 = vpop.f32.mrb[14].mxu1 }
 0x1e3   : > { %v2817_v1 = vpop.f32.mrb[15].mxu0  ;;  %v1729_v2 = vsel %vm1418_vm2, %v1643_v63, -inf  ;;  %v2822_v4 = vpop.f32.mrb[15].mxu1  ;;  %v1732_v5 = vsel %vm1418_vm2, %v1719_v0, -inf }
 0x1e4   : > { %1730 = vmax.xlane.f32.xlu1 %v1729_v2 }
 0x1e8   : > { %1733 = vmax.xlane.f32.xlu1 %v1732_v5 }
 0x269   : > { %v1725_v6 = vpop.xlane.xlu0 %1724 }
 0x26a   : > { %v1735_v7 = vsub.f32 %v1491_v57, %v1725_v6 }
 0x26c   : > { %v1739_v8 = vmul.f32 1.442695, %v1735_v7 }
 0x26d   : > { %v1728_v9 = vpop.xlane.xlu0 %1727 }
 0x26e   : > { %3000 = vpow2.f32 %v1739_v8  ;;  %v1736_v10 = vsub.f32 %v1567_v58, %v1728_v9 }
 0x270   : > { %v1741_v12 = vmul.f32 1.442695, %v1736_v10 }
 0x271   : > { %v1731_v13 = vpop.xlane.xlu1 %1730 }
 0x272   : > { %3002 = vpow2.f32 %v1741_v12  ;;  %v1737_v3 = vsub.f32 %v1643_v63, %v1731_v13 }
 0x274   : > { %v1743_v14 = vmul.f32 1.442695, %v1737_v3 }
 0x275   : > { %v1734_v15 = vpop.xlane.xlu1 %1733 }
 0x276   : > { %3004 = vpow2.f32 %v1743_v14  ;;  %v1738_v16 = vsub.f32 %v1719_v0, %v1734_v15 }
 0x278   : > { %v3001_v17 = vpop.eup %3000  ;;  %v1745_v18 = vmul.f32 1.442695, %v1738_v16 }
 0x279   : > { %v1747_v19 = vsel %vm1418_vm2, %v3001_v17, 0.0 }
 0x27a   : > { %3006 = vpow2.f32 %v1745_v18  ;;  %1748 = vadd.xlane.f32.xlu0 %v1747_v19 }
 0x27c   : > { %v3003_v20 = vpop.eup %3002 }
 0x27d   : > { %v1750_v21 = vsel %vm1418_vm2, %v3003_v20, 0.0 }
 0x27e   : > { %1751 = vadd.xlane.f32.xlu1 %v1750_v21 }
 0x280   : > { %v3005_v22 = vpop.eup %3004 }
 0x281   : > { %v1753_v23 = vsel %vm1418_vm2, %v3005_v22, 0.0 }
 0x282   : > { %1754 = vadd.xlane.f32.xlu0 %v1753_v23 }
 0x284   : > { %v3007_v24 = vpop.eup %3006 }
 0x285   : > { %v1756_v25 = vsel %vm1418_vm2, %v3007_v24, 0.0 }
 0x286   : > { %1757 = vadd.xlane.f32.xlu1 %v1756_v25 }
 0x307   : > { %v1749_v26 = vpop.xlane.xlu0 %1748 }
 0x308   : > { %3008 = vrcp.f32 %v1749_v26 }
 0x30b   : > { %v1752_v27 = vpop.xlane.xlu1 %1751 }
 0x30c   : > { %3010 = vrcp.f32 %v1752_v27 }
 0x30f   : > { %v1755_v28 = vpop.xlane.xlu0 %1754 }
 0x310   : > { %3012 = vrcp.f32 %v1755_v28 }
 0x312   : > { %v3009_v30 = vpop.eup %3008 }
 0x313   : > { %v1763_v31 = vmul.f32 %v3009_v30, %v3001_v17  ;;  %v1758_v32 = vpop.xlane.xlu1 %1757 }
 0x314   : > { %3014 = vrcp.f32 %v1758_v32 }
 0x315   : > { %2826 = vmatmul.mubr.msk.f32.vlgmr.msra.gmra.mrb[16].mxu0 %vm1418_vm2, %v1763_v31  ;;  %1767 = vst.msk [vmem:[%s3558_s15] sm:$0xff] %vm1418_vm2, %v1763_v31 }
 0x316   : > { %v3011_v35 = vpop.eup %3010  ;;  %2834 = vmatpush3.msra.mxu0 %v1345_v33  ;;  %2835 = vmatprep.mubr.msk.f32.mxu0 %vm3129_vm0, %v3130_v11 }
 0x317   : > { %v1764_v36 = vmul.f32 %v3011_v35, %v3003_v20  ;;  %2843 = vmatprep.subr.mxu0 %v3130_v11 }
 0x319   : > { %2831 = vmatmul.mubr.msk.f32.vlgmr.msra.gmra.mrb[16].mxu1 %vm1418_vm2, %v1764_v36  ;;  %1768 = vst.msk [vmem:[%s3558_s15 + $0x8] sm:$0xff] %vm1418_vm2, %v1764_v36 }
 0x31a   : > { %v3013_v38 = vpop.eup %3012  ;;  %2839 = vmatpush3.msra.mxu1 %v1415_v37  ;;  %2840 = vmatprep.mubr.msk.f32.mxu1 %vm3129_vm0, %v3130_v11 }
 0x31b   : > { %v1765_v39 = vmul.f32 %v3013_v38, %v3005_v22  ;;  %2848 = vmatprep.subr.mxu1 %v3130_v11 }
 0x31d   : > { %2836 = vmatmul.mubr.msk.f32.vlgmr.msra.gmra.mrb[18].mxu0 %vm1418_vm2, %v1765_v39  ;;  %1769 = vst.msk [vmem:[%s3558_s15 + $0x10] sm:$0xff] %vm1418_vm2, %v1765_v39 }
 0x31e   : > { %v3015_v40 = vpop.eup %3014  ;;  %2845 = vmatprep.mubr.msk.f32.mxu0 %vm3129_vm0, %v3130_v11  ;;  %2844 = vmatpush3.msra.mxu0 %v2063_v42 }
 0x31f   : > { %v1766_v41 = vmul.f32 %v3015_v40, %v3007_v24  ;;  %2853 = vmatprep.subr.mxu0 %v3130_v11 }
 0x321   : > { %2841 = vmatmul.mubr.msk.f32.vlgmr.msra.gmra.mrb[18].mxu1 %vm1418_vm2, %v1766_v41  ;;  %1770 = vst.msk [vmem:[%s3558_s15 + $0x18] sm:$0xff] %vm1418_vm2, %v1766_v41  ;;  %s3022_s15 = scalar_lea.vmem %s3021_s30, 1024 }
 0x322   : > { %2850 = vmatprep.mubr.msk.f32.mxu1 %vm3129_vm0, %v3130_v11  ;;  %2849 = vmatpush3.msra.mxu1 %v2064_v43  ;;  %p3024_p2 = scmp.lt.s32.totalorder %s3022_s15, %s3016_s12 }
 0x323   : > { %2858 = vmatprep.subr.mxu1 %v3130_v11 }
 0x324   : > { %p3025_p3 = por %p3024_p2, %p3023_p1 }
 0x326   : > { %p3026_p5 = pnand %p3025_p3, %p3019_p0 }
 0x3e8   : > { %v1840_v45 = vpop.f32.mrb[16].mxu0 }
 0x3e9   : > { %v2827_v46 = vpop.f32.mrb[17].mxu0  ;;  %2846 = vmatmul.mubr.msk.f32.vlgmr.msra.gmra.mrb[20].mxu0 %vm1418_vm2, %v1840_v45 }
 0x3ea   : > { %2854 = vmatpush3.msra.mxu0 %v2065_v44  ;;  %2855 = vmatprep.mubr.msk.f32.mxu0 %vm3129_vm0, %v3130_v11 }
 0x3ec   : > { %v1913_v48 = vpop.f32.mrb[16].mxu1 }
 0x3ed   : > { %v2832_v49 = vpop.f32.mrb[17].mxu1  ;;  %2851 = vmatmul.mubr.msk.f32.vlgmr.msra.gmra.mrb[20].mxu1 %vm1418_vm2, %v1913_v48 }
 0x3ee   : > { %2859 = vmatpush3.msra.mxu1 %v2066_v47  ;;  %2860 = vmatprep.mubr.msk.f32.mxu1 %vm3129_vm0, %v3130_v11 }
 0x3f0   : > { %v1986_v50 = vpop.f32.mrb[18].mxu0 }
 0x3f1   : > { %v2837_v51 = vpop.f32.mrb[19].mxu0  ;;  %2856 = vmatmul.mubr.msk.f32.vlgmr.msra.gmra.mrb[22].mxu0 %vm1418_vm2, %v1986_v50 }
 0x3f4   : > { %v2059_v52 = vpop.f32.mrb[18].mxu1 }
 0x3f5   : > { %v2842_v53 = vpop.f32.mrb[19].mxu1  ;;  %2861 = vmatmul.mubr.msk.f32.vlgmr.msra.gmra.mrb[22].mxu1 %vm1418_vm2, %v2059_v52 }
 0x3f6   : > { %3029 = shalt.err (!%p3026_p5)
}
 0x3f7   : > { %s3030_s16 = scalar_lea.hbm %s3611_s28, 512  ;;  %s3034_s24 = scalar_lea.hbm %s3709_s11, 1024 }
 0x3f8   : > { %p3031_p6 = scmp.ne.s32.totalorder %s3611_s28, %s3030_s16  ;;  %p3035_p10 = scmp.lt.u32.totalorder %s3611_s28, %s3709_s11 }
 0x3f9   : > { %p3036_p11 = scmp.lt.u32.totalorder %s3034_s24, %s3030_s16  ;;  %p3038_p13 = scmp.lt.u32.totalorder %s3030_s16, %s3611_s28 }
 0x3fa   : > { %p3032_p7 = pnand %p3031_p6, %p3235_p4 }
 0x3fb   : > { %p3037_p12 = por %p3036_p11, %p3035_p10 }
 0x3fc   : > { %p3033_p9 = pneg %p3032_p7 }
 0x3fd   : > { %p3039_p0 = por %p3038_p13, %p3037_p12 }
 0x3ff   : > { %p3040_p1 = pnand %p3039_p0, %p3033_p9 }
 0x401   : > { %3043 = shalt.err (!%p3040_p1)
}
 0x402   : > { %s3132_s12 = smov 128   ;;  %s3133_s15 = smov 8   ;;  %v2578_v2 = vld [vmem:[%s3707_s9] ss:$0 sm:$0xff] }
 0x403   : > { %2936 = dma.vmem_to_hbm [thread:$0]  (%p3235_p4), %s3606_s23, 512, %s3611_s28, %s2381_s13, %s3132_s12, %s3132_s12, %s3133_s15  }
 0x404   : > { %s2534_s16 = sshll.u32 %s3548_s14, 3  ;;  %s2581_s13 = sshll.u32 %s3118_s20, 7 }
 0x405   : > { %s418_s25 = scalar_lea.vmem [#allocation2], %s2534_s16  ;;  %s3649_s30 = scalar_lea.hbm %s3708_s10, %s2581_s13 }
 0x406   : > { %s2395_s26 = sshll.u32 %s418_s25, 4  ;;  %s2376_s12 = scalar_lea.sflag [#allocation3], %s3548_s14  ;;  %s3651_s26 = int_to_ptr.vmem [resolvable:$true] %s2395_s26 }
 0x407   : > { %s3044_s15 = scalar_lea.vmem %s3651_s26, 128  ;;  %s3134_s20 = smov [#allocation2]  }
 0x408   : > { %p3045_p2 = scmp.ne.s32.totalorder %s3651_s26, %s3044_s15  ;;  %s3048_s16 = sshll.u32 %s3134_s20, 4  ;;  %s3049_s16 = int_to_ptr.vmem [resolvable:$false] %s3048_s16 }
 0x409   : > { %s3050_s23 = scalar_lea.vmem %s3049_s16, 256  ;;  %p3051_p6 = scmp.lt.s32.totalorder %s3651_s26, %s3049_s16 }
 0x40a   : > { %p3046_p3 = pnand %p3045_p2, %p3235_p4  ;;  %p3052_p7 = scmp.lt.s32.totalorder %s3050_s23, %s3044_s15 }
 0x40c   : > { %p3047_p5 = pneg %p3046_p3  ;;  %p3053_p9 = por %p3052_p7, %p3051_p6 }
 0x40e   : > { %p3054_p10 = pnand %p3053_p9, %p3047_p5 }
 0x4bc   : > { %v2136_v11 = vpop.f32.mrb[20].mxu0 }
 0x4bd   : > { %v2847_v54 = vpop.f32.mrb[21].mxu0  ;;  %v2359_v56 = vsel %vm483_vm1, %v2136_v11, 0.0 }
 0x4c0   : > { %v2209_v55 = vpop.f32.mrb[20].mxu1 }
 0x4c1   : > { %v2360_v57 = vsel %vm483_vm1, %v2209_v55, 0.0  ;;  %v2852_v58 = vpop.f32.mrb[21].mxu1 }
 0x4c2   : > { %v2361_v59 = vadd.f32 %v2360_v57, %v2359_v56 }
 0x4c4   : > { %v2282_v60 = vpop.f32.mrb[22].mxu0 }
 0x4c5   : > { %v2362_v61 = vsel %vm483_vm1, %v2282_v60, 0.0  ;;  %v2857_v62 = vpop.f32.mrb[23].mxu0 }
 0x4c6   : > { %v2363_v63 = vadd.f32 %v2362_v61, %v2361_v59 }
 0x4c8   : > { %v2355_v0 = vpop.f32.mrb[22].mxu1 }
 0x4c9   : > { %v2364_v1 = vsel %vm483_vm1, %v2355_v0, 0.0  ;;  %v2862_v4 = vpop.f32.mrb[23].mxu1 }
 0x4ca   : > { %v2365_v5 = vadd.f32 %v2364_v1, %v2363_v63 }
 0x4cc   : > { %v2373_v6 = vadd.f32 %v2578_v2, %v2365_v5 }
 0x4ce   : > { %2374 = vst.msk [vmem:[%s418_s25] sm:$0xff] %vm483_vm1, %v2373_v6 }
 0x4cf   : > { %3057 = shalt.err (!%p3054_p10)
}
 0x4d0   : > { %s3058_s14 = scalar_lea.hbm %s3649_s30, 128  ;;  %s3062_s25 = scalar_lea.hbm %s3708_s10, 256 }
 0x4d1   : > { %p3059_p11 = scmp.ne.s32.totalorder %s3649_s30, %s3058_s14  ;;  %p3063_p0 = scmp.lt.u32.totalorder %s3649_s30, %s3708_s10 }
 0x4d2   : > { %p3064_p1 = scmp.lt.u32.totalorder %s3062_s25, %s3058_s14  ;;  %p3066_p3 = scmp.lt.u32.totalorder %s3058_s14, %s3649_s30 }
 0x4d3   : > { %p3060_p12 = pnand %p3059_p11, %p3235_p4 }
 0x4d4   : > { %p3065_p2 = por %p3064_p1, %p3063_p0 }
 0x4d5   : > { %p3061_p13 = pneg %p3060_p12 }
 0x4d6   : > { %p3067_p5 = por %p3066_p3, %p3065_p2 }
 0x4d8   : > { %p3068_p6 = pnand %p3067_p5, %p3061_p13 }
 0x4da   : > { %3071 = shalt.err (!%p3068_p6)
}
 0x4db   : > { %2935 = dma.vmem_to_hbm [thread:$0]  (%p3235_p4), %s3651_s26, 128, %s3649_s30, %s2376_s12  }
 0x4dc PF: > { %p2946_p7 = scmp.ge.s32.totalorder %s3126_s22, 2  ;;  %s2424_s15 = sand.u32 1, %s3106_s17  }
 0x4dd   : > { %s2425_s20 = scalar_lea.sflag [#allocation3], %s2424_s15 }
 0x4de   : > { %p2940_p9 = pnand %p2946_p7, %p3242_p8 }
 0x4e0   : > { %3097 = dma.done.wait (!%p2940_p9), %s2425_s20, 128  }
 0x4e1   : > { %3099 = vsyncadd (!%p2940_p9), %s2425_s20, 4294967168  ;;  %s2434_s16 = scalar_lea.sflag [#allocation5], %s2424_s15 }
 0x4e2   : > { %3101 = dma.done.wait (!%p2940_p9), %s2434_s16, 512  }
 0x4e3   : > { %3103 = vsyncadd (!%p2940_p9), %s2434_s16, 4294966784  ;;  %s28_s22 = sadd.s32 1, %s3126_s22   ;;  %s3717_s27 = sld [smem:[#allocation10_spill]] }
 0x4e4   : > { %p25_p10 = scmp.ge.s32.totalorder %s28_s22, 4   ;;  %s3718_s20 = sld [smem:[#allocation8_spill]] }
 0x4e5   : > { %s3719_s21 = sld [smem:[#allocation9_spill]]  ;;  %s3720_s17 = smov %s3110_s18 }
 0x4e6   : > { %s3721_s18 = smov %s3114_s19  ;;  %27 = sbr.rel (!%p25_p10) target bundleno = 6 (0x6), region = 115 }
 0x4e9   : > { %s3722_s19 = smov %s3717_s27 }
 0x4ed   :  { %2439 = vsyncpa [#allocation3], 1 }
 0x4ee   :  { %2441 = vsyncpa [#allocation3 + $0x1], 1 }
 0x4ef   :  { %2442 = vsyncpa [#allocation5], 1 }
 0x4f0   :  { %2444 = vsyncpa [#allocation5 + $0x1], 1 }

</bundles_post_ra>
